<compile_context>
chip_gen: v7x
topology: tpu7x:2x2x1
jax: 0.10.0
libtpu: 0.0.40
codegen_flags: <defaults>
</compile_context>

<pallas_src>
import functools
import math

import jax
import jax.numpy as jnp
from jax.experimental import pallas as pl
from jax.experimental.pallas import tpu as pltpu

LEAKY_ALPHA = 0.2
RELATIONS = {"difference": True, "abs_difference": True, "elem_product": True}
LANE = 128


def _gat_kernel(x_ref, w_ref, a_lin_ref, a_nl_ref, src_row_ref, src_col_ref,
                dst_col_ref, out_ref, *, use_abs_diff, use_elem_product,
                leaky_alpha):
    x = x_ref[...]               # [N, Fin]
    w = w_ref[...]               # [Fin, Fp]
    a_lin = a_lin_ref[...]       # [Fp, 2]  col0 = a_src', col1 = a_dst'
    a_nl = a_nl_ref[...]         # [2, Fp]  row0 = a_abs,  row1 = a_prod
    src_row = src_row_ref[...]   # [1, E] int32 (lane-major)
    src_col = src_col_ref[...]   # [E, 1] int32
    dst_col = dst_col_ref[...]   # [E, 1] int32

    n = x.shape[0]
    e = src_row.shape[1]

    # h = input @ weight  (MXU), lane-dense Fp columns.
    h = jnp.dot(x, w, preferred_element_type=jnp.float32)            # [N, Fp]

    # One-hot matrices, each built directly in the orientation it is used in
    # (no in-kernel transposes).
    ids_en = jax.lax.broadcasted_iota(jnp.int32, (e, n), 1)           # [E, N]
    ids_ne = jax.lax.broadcasted_iota(jnp.int32, (n, e), 0)           # [N, E]
    src_mask = ids_en == src_col                                      # [E, N]
    src_oh = src_mask.astype(jnp.float32)                             # [E, N]
    dst_oh = (ids_en == dst_col).astype(jnp.float32)                  # [E, N]
    src_oh_t = (ids_ne == src_row).astype(jnp.float32)                # [N, E]

    # Gather edge endpoint features via MXU (one-hot @ h).
    h_src = jnp.dot(src_oh, h, preferred_element_type=jnp.float32)    # [E, Fp]
    h_dst = jnp.dot(dst_oh, h, preferred_element_type=jnp.float32)    # [E, Fp]

    # Attention logits: folded linear terms as two small MXU matmuls,
    # nonlinear terms as VPU mult + full-lane reductions.
    logits = jnp.dot(h_src, a_lin[:, 0:1], preferred_element_type=jnp.float32)
    logits = logits + jnp.dot(h_dst, a_lin[:, 1:2],
                              preferred_element_type=jnp.float32)     # [E, 1]
    if use_abs_diff:
        d = h_dst - h_src
        logits = logits + jnp.sum(jnp.abs(d) * a_nl[0:1, :],
                                  axis=1, keepdims=True)
    if use_elem_product:
        logits = logits + jnp.sum((h_src * h_dst) * a_nl[1:2, :],
                                  axis=1, keepdims=True)

    # LeakyReLU.
    logits = jnp.where(logits > 0, logits, leaky_alpha * logits)      # [E, 1]

    # Segment softmax over src, per-edge [E,1] math.
    neg_big = jnp.float32(-1e30)
    seg_max_n = jnp.max(jnp.where(src_mask, logits, neg_big),
                        axis=0, keepdims=True)                        # [1, N]
    seg_max_e = jnp.sum(src_oh * seg_max_n, axis=1, keepdims=True)    # [E, 1]
    p = jnp.exp(logits - seg_max_e)                                   # [E, 1]
    seg_sum_n = jnp.sum(src_oh * p, axis=0, keepdims=True)            # [1, N]
    seg_sum_e = jnp.sum(src_oh * seg_sum_n, axis=1, keepdims=True)    # [E, 1]
    alpha = p * pl.reciprocal(seg_sum_e + 1e-16, approx=False)        # [E, 1]

    # TODO(synk): dropout on alpha omitted (eval-mode identity).

    # spmm scatter: out[i] = sum_{e: src==i} alpha_e * h_dst[e]  — standard
    # [N,E] @ [E,Fp] MXU matmul with the directly-built transposed one-hot.
    out = jnp.dot(src_oh_t, alpha * h_dst,
                  preferred_element_type=jnp.float32)                 # [N, Fp]
    out_ref[...] = out.astype(out_ref.dtype)


def graph_att_conv_one_head(x, weight, a, edge_src, edge_dst,
                            relations=RELATIONS, leaky_alpha=LEAKY_ALPHA):
    n, fin = x.shape
    fout = weight.shape[1]
    e = int(edge_src.shape[0])
    fp = max(LANE, pl.cdiv(fout, LANE) * LANE)
    pad = fp - fout

    use_diff = bool(relations.get("difference", False))
    use_abs = bool(relations.get("abs_difference", False))
    use_prod = bool(relations.get("elem_product", False))
    n_terms = 2 + int(use_diff) + int(use_abs) + int(use_prod)
    assert a.shape == (1, n_terms * fout)

    # Split `a` following the forward() concat order and fold the linear terms.
    a_flat = a.reshape(-1)
    off = 0
    a_src = a_flat[off:off + fout]; off += fout
    a_dst = a_flat[off:off + fout]; off += fout
    if use_diff:
        a_diff = a_flat[off:off + fout]; off += fout
        a_src_eff = a_src - a_diff
        a_dst_eff = a_dst + a_diff
    else:
        a_src_eff, a_dst_eff = a_src, a_dst
    a_abs = a_flat[off:off + fout] if use_abs else jnp.zeros((fout,), jnp.float32)
    if use_abs:
        off += fout
    a_prod = a_flat[off:off + fout] if use_prod else jnp.zeros((fout,), jnp.float32)

    # Lane-dense padding (Fout -> Fp).
    w_pad = jnp.pad(weight.astype(jnp.float32), ((0, 0), (0, pad)))
    a_lin = jnp.stack([jnp.pad(a_src_eff, (0, pad)),
                       jnp.pad(a_dst_eff, (0, pad))], axis=1)      # [Fp, 2]
    a_nl = jnp.stack([jnp.pad(a_abs, (0, pad)),
                      jnp.pad(a_prod, (0, pad))], axis=0)          # [2, Fp]

    src_row = edge_src.reshape(1, e).astype(jnp.int32)             # [1, E]
    src_col = edge_src.reshape(e, 1).astype(jnp.int32)             # [E, 1]
    dst_col = edge_dst.reshape(e, 1).astype(jnp.int32)             # [E, 1]

    kernel = functools.partial(
        _gat_kernel,
        use_abs_diff=use_abs,
        use_elem_product=use_prod,
        leaky_alpha=leaky_alpha,
    )

    # Rough VMEM footprint of inputs + in-kernel temporaries, with headroom.
    tmp_bytes = 4 * (n * fin + fin * fp + 6 * fp + 3 * e
                     + 2 * n * fp            # h, out
                     + 6 * e * n             # one-hots / masks / scores
                     + 6 * e * fp)           # h_src, h_dst, d, prod, weighted
    vmem_limit = int(min(64 << 20, max(8 << 20, 2 * tmp_bytes)))

    cost = pl.CostEstimate(
        flops=int(2 * n * fin * fp + 6 * e * n * fp + 4 * e * fp + 8 * e * n),
        transcendentals=int(2 * e),
        bytes_accessed=int(4 * (n * fin + fin * fp + 4 * fp + 3 * e + n * fp)),
    )

    vmem_spec = pl.BlockSpec(memory_space=pltpu.MemorySpace.VMEM)
    out_pad = pl.pallas_call(
        kernel,
        out_shape=jax.ShapeDtypeStruct((n, fp), jnp.float32),
        in_specs=[vmem_spec] * 7,
        out_specs=vmem_spec,
        compiler_params=pltpu.CompilerParams(vmem_limit_bytes=vmem_limit),
        cost_estimate=cost,
    )(x, w_pad, a_lin, a_nl, src_row, src_col, dst_col)
    return out_pad[:, :fout]


def _reference(x, weight, a, edge_src, edge_dst, relations, leaky_alpha):
    n = x.shape[0]
    h = x @ weight
    h_src = h[edge_src]
    h_dst = h[edge_dst]
    feats = [h_src, h_dst]
    if relations["difference"]:
        feats.append(h_dst - h_src)
    if relations["abs_difference"]:
        feats.append(jnp.abs(h_dst - h_src))
    if relations["elem_product"]:
        feats.append(h_src * h_dst)
    edge_h = jnp.concatenate(feats, axis=1)
    logits = edge_h @ a[0]
    logits = jnp.where(logits > 0, logits, leaky_alpha * logits)
    seg_max = jax.ops.segment_max(logits, edge_src, num_segments=n)
    out = jnp.exp(logits - seg_max[edge_src])
    seg_sum = jax.ops.segment_sum(out, edge_src, num_segments=n)
    alpha = out / (seg_sum[edge_src] + 1e-16)
    return jax.ops.segment_sum(alpha[:, None] * h_dst, edge_src, num_segments=n)


if __name__ == "__main__":
    N, FIN, FOUT = 16, 8, 16
    n_terms = 2 + sum(1 for v in RELATIONS.values() if v)
    CONCAT = n_terms * FOUT

    key = jax.random.PRNGKey(0)
    kx, kw, ka = jax.random.split(key, 3)

    x = jax.random.normal(kx, (N, FIN), dtype=jnp.float32)

    # Xavier-normal init with gain = calculate_gain('relu') = sqrt(2)
    gain = math.sqrt(2.0)
    w_std = gain * math.sqrt(2.0 / (FIN + FOUT))
    a_std = gain * math.sqrt(2.0 / (1 + CONCAT))
    weight = jax.random.normal(kw, (FIN, FOUT), dtype=jnp.float32) * w_std
    a = jax.random.normal(ka, (1, CONCAT), dtype=jnp.float32) * a_std

    # Deterministic sparse adjacency: self-loops + directed ring.  edge = [2, E]
    ids = jnp.arange(N, dtype=jnp.int32)
    edge_src = jnp.concatenate([ids, ids])                 # edge[0]
    edge_dst = jnp.concatenate([ids, (ids + 1) % N])       # edge[1]

    out = graph_att_conv_one_head(x, weight, a, edge_src, edge_dst)
    out = jax.block_until_ready(out)

    ref = _reference(x, weight, a, edge_src, edge_dst, RELATIONS, LEAKY_ALPHA)
    assert out.shape == (N, FOUT)
    assert jnp.allclose(out, ref, rtol=5e-4, atol=5e-4), (
        f"max abs diff {jnp.max(jnp.abs(out - ref))}")
    print("KERNEL_OK")
</pallas_src>

<mosaic_0001>
module attributes {stable_mosaic.version = 11 : i64} {
  func.func @_gat_kernel(%arg0: memref<16x8xf32, #tpu.memory_space<vmem>>, %arg1: memref<8x128xf32, #tpu.memory_space<vmem>>, %arg2: memref<128x2xf32, #tpu.memory_space<vmem>>, %arg3: memref<2x128xf32, #tpu.memory_space<vmem>>, %arg4: memref<1x32xi32, #tpu.memory_space<vmem>>, %arg5: memref<32x1xi32, #tpu.memory_space<vmem>>, %arg6: memref<32x1xi32, #tpu.memory_space<vmem>>, %arg7: memref<16x128xf32, #tpu.memory_space<vmem>>) attributes {dimension_semantics = [], scalar_prefetch = 0 : i64, scratch_operands = 0 : i64, tpu.core_type = #tpu.core_type<tc>} {
    %c0 = arith.constant 0 : index
    %c0_0 = arith.constant 0 : index
    %0 = vector.load %arg0[%c0, %c0_0] : memref<16x8xf32, #tpu.memory_space<vmem>>, vector<16x8xf32>
    %c0_1 = arith.constant 0 : index
    %c0_2 = arith.constant 0 : index
    %1 = vector.load %arg1[%c0_1, %c0_2] : memref<8x128xf32, #tpu.memory_space<vmem>>, vector<8x128xf32>
    %c0_3 = arith.constant 0 : index
    %c0_4 = arith.constant 0 : index
    %2 = vector.load %arg2[%c0_3, %c0_4] : memref<128x2xf32, #tpu.memory_space<vmem>>, vector<128x2xf32>
    %c0_5 = arith.constant 0 : index
    %c0_6 = arith.constant 0 : index
    %3 = vector.load %arg3[%c0_5, %c0_6] : memref<2x128xf32, #tpu.memory_space<vmem>>, vector<2x128xf32>
    %c0_7 = arith.constant 0 : index
    %c0_8 = arith.constant 0 : index
    %4 = vector.load %arg4[%c0_7, %c0_8] : memref<1x32xi32, #tpu.memory_space<vmem>>, vector<1x32xi32>
    %c0_9 = arith.constant 0 : index
    %c0_10 = arith.constant 0 : index
    %5 = vector.load %arg5[%c0_9, %c0_10] : memref<32x1xi32, #tpu.memory_space<vmem>>, vector<32x1xi32>
    %c0_11 = arith.constant 0 : index
    %c0_12 = arith.constant 0 : index
    %6 = vector.load %arg6[%c0_11, %c0_12] : memref<32x1xi32, #tpu.memory_space<vmem>>, vector<32x1xi32>
    %cst = arith.constant dense<0.000000e+00> : vector<16x128xf32>
    %7 = tpu.matmul %0, %1, %cst {dimension_numbers = #tpu.dot_dimension_numbers<[1], [0], [0], [1], [0, 0, 1, 1], [], []>} : vector<16x8xf32>, vector<8x128xf32>, vector<16x128xf32> -> vector<16x128xf32>
    %8 = tpu.iota {dimensions = array<i32: 1>} : vector<32x16xi32>
    %9 = tpu.iota {dimensions = array<i32: 0>} : vector<16x32xi32>
    %10 = vector.broadcast %5 : vector<32x1xi32> to vector<32x16xi32>
    %11 = arith.cmpi eq, %8, %10 : vector<32x16xi32>
    %12 = arith.extui %11 : vector<32x16xi1> to vector<32x16xi32>
    %13 = arith.sitofp %12 : vector<32x16xi32> to vector<32x16xf32>
    %14 = vector.broadcast %6 : vector<32x1xi32> to vector<32x16xi32>
    %15 = arith.cmpi eq, %8, %14 : vector<32x16xi32>
    %16 = arith.extui %15 : vector<32x16xi1> to vector<32x16xi32>
    %17 = arith.sitofp %16 : vector<32x16xi32> to vector<32x16xf32>
    %18 = vector.broadcast %4 : vector<1x32xi32> to vector<16x32xi32>
    %19 = arith.cmpi eq, %9, %18 : vector<16x32xi32>
    %20 = arith.extui %19 : vector<16x32xi1> to vector<16x32xi32>
    %21 = arith.sitofp %20 : vector<16x32xi32> to vector<16x32xf32>
    %cst_13 = arith.constant dense<0.000000e+00> : vector<32x128xf32>
    %22 = tpu.matmul %13, %7, %cst_13 {dimension_numbers = #tpu.dot_dimension_numbers<[1], [0], [0], [1], [0, 0, 1, 1], [], []>} : vector<32x16xf32>, vector<16x128xf32>, vector<32x128xf32> -> vector<32x128xf32>
    %cst_14 = arith.constant dense<0.000000e+00> : vector<32x128xf32>
    %23 = tpu.matmul %17, %7, %cst_14 {dimension_numbers = #tpu.dot_dimension_numbers<[1], [0], [0], [1], [0, 0, 1, 1], [], []>} : vector<32x16xf32>, vector<16x128xf32>, vector<32x128xf32> -> vector<32x128xf32>
    %24 = vector.extract_strided_slice %2 {offsets = [0, 0], sizes = [128, 1], strides = [1, 1]} : vector<128x2xf32> to vector<128x1xf32>
    %cst_15 = arith.constant dense<0.000000e+00> : vector<32x1xf32>
    %25 = tpu.matmul %22, %24, %cst_15 {dimension_numbers = #tpu.dot_dimension_numbers<[1], [0], [0], [1], [0, 0, 1, 1], [], []>} : vector<32x128xf32>, vector<128x1xf32>, vector<32x1xf32> -> vector<32x1xf32>
    %26 = vector.extract_strided_slice %2 {offsets = [0, 1], sizes = [128, 1], strides = [1, 1]} : vector<128x2xf32> to vector<128x1xf32>
    %cst_16 = arith.constant dense<0.000000e+00> : vector<32x1xf32>
    %27 = tpu.matmul %23, %26, %cst_16 {dimension_numbers = #tpu.dot_dimension_numbers<[1], [0], [0], [1], [0, 0, 1, 1], [], []>} : vector<32x128xf32>, vector<128x1xf32>, vector<32x1xf32> -> vector<32x1xf32>
    %28 = arith.addf %25, %27 : vector<32x1xf32>
    %29 = arith.subf %23, %22 : vector<32x128xf32>
    %30 = math.absf %29 : vector<32x128xf32>
    %31 = vector.extract_strided_slice %3 {offsets = [0, 0], sizes = [1, 128], strides = [1, 1]} : vector<2x128xf32> to vector<1x128xf32>
    %32 = vector.broadcast %31 : vector<1x128xf32> to vector<32x128xf32>
    %33 = arith.mulf %30, %32 : vector<32x128xf32>
    %cst_17 = arith.constant dense<0.000000e+00> : vector<32xf32>
    %34 = vector.multi_reduction <add>, %33, %cst_17 [1] : vector<32x128xf32> to vector<32xf32>
    %35 = vector.shape_cast %34 : vector<32xf32> to vector<32x1xf32>
    %36 = arith.addf %28, %35 : vector<32x1xf32>
    %37 = arith.mulf %22, %23 : vector<32x128xf32>
    %38 = vector.extract_strided_slice %3 {offsets = [1, 0], sizes = [1, 128], strides = [1, 1]} : vector<2x128xf32> to vector<1x128xf32>
    %39 = vector.broadcast %38 : vector<1x128xf32> to vector<32x128xf32>
    %40 = arith.mulf %37, %39 : vector<32x128xf32>
    %cst_18 = arith.constant dense<0.000000e+00> : vector<32xf32>
    %41 = vector.multi_reduction <add>, %40, %cst_18 [1] : vector<32x128xf32> to vector<32xf32>
    %42 = vector.shape_cast %41 : vector<32xf32> to vector<32x1xf32>
    %43 = arith.addf %36, %42 : vector<32x1xf32>
    %cst_19 = arith.constant 0.000000e+00 : f32
    %44 = vector.broadcast %cst_19 : f32 to vector<32x1xf32>
    %45 = arith.cmpf ogt, %43, %44 : vector<32x1xf32>
    %cst_20 = arith.constant 2.000000e-01 : f32
    %46 = vector.broadcast %cst_20 : f32 to vector<32x1xf32>
    %47 = arith.mulf %46, %43 : vector<32x1xf32>
    %48 = arith.select %45, %43, %47 : vector<32x1xi1>, vector<32x1xf32>
    %cst_21 = arith.constant -1.000000e+30 : f32
    %49 = vector.shape_cast %48 : vector<32x1xf32> to vector<32x1xf32>
    %50 = vector.broadcast %49 : vector<32x1xf32> to vector<32x16xf32>
    %51 = vector.broadcast %cst_21 : f32 to vector<32x16xf32>
    %52 = arith.select %11, %50, %51 : vector<32x16xi1>, vector<32x16xf32>
    %cst_22 = arith.constant dense<0xFF800000> : vector<16xf32>
    %53 = vector.multi_reduction <maximumf>, %52, %cst_22 [0] : vector<32x16xf32> to vector<16xf32>
    %54 = vector.shape_cast %53 : vector<16xf32> to vector<1x16xf32>
    %55 = vector.broadcast %54 : vector<1x16xf32> to vector<32x16xf32>
    %56 = arith.mulf %13, %55 : vector<32x16xf32>
    %cst_23 = arith.constant dense<0.000000e+00> : vector<32xf32>
    %57 = vector.multi_reduction <add>, %56, %cst_23 [1] : vector<32x16xf32> to vector<32xf32>
    %58 = vector.shape_cast %57 : vector<32xf32> to vector<32x1xf32>
    %59 = arith.subf %48, %58 : vector<32x1xf32>
    %60 = math.exp %59 : vector<32x1xf32>
    %61 = vector.broadcast %60 : vector<32x1xf32> to vector<32x16xf32>
    %62 = arith.mulf %13, %61 : vector<32x16xf32>
    %cst_24 = arith.constant dense<0.000000e+00> : vector<16xf32>
    %63 = vector.multi_reduction <add>, %62, %cst_24 [0] : vector<32x16xf32> to vector<16xf32>
    %64 = vector.shape_cast %63 : vector<16xf32> to vector<1x16xf32>
    %65 = vector.broadcast %64 : vector<1x16xf32> to vector<32x16xf32>
    %66 = arith.mulf %13, %65 : vector<32x16xf32>
    %cst_25 = arith.constant dense<0.000000e+00> : vector<32xf32>
    %67 = vector.multi_reduction <add>, %66, %cst_25 [1] : vector<32x16xf32> to vector<32xf32>
    %68 = vector.shape_cast %67 : vector<32xf32> to vector<32x1xf32>
    %cst_26 = arith.constant 1.000000e-16 : f32
    %69 = vector.broadcast %cst_26 : f32 to vector<32x1xf32>
    %70 = arith.addf %68, %69 : vector<32x1xf32>
    %71 = tpu.reciprocal %70 : vector<32x1xf32> -> vector<32x1xf32>
    %72 = arith.mulf %60, %71 : vector<32x1xf32>
    %73 = vector.broadcast %72 : vector<32x1xf32> to vector<32x128xf32>
    %74 = arith.mulf %73, %23 : vector<32x128xf32>
    %cst_27 = arith.constant dense<0.000000e+00> : vector<16x128xf32>
    %75 = tpu.matmul %21, %74, %cst_27 {dimension_numbers = #tpu.dot_dimension_numbers<[1], [0], [0], [1], [0, 0, 1, 1], [], []>} : vector<16x32xf32>, vector<32x128xf32>, vector<16x128xf32> -> vector<16x128xf32>
    %c0_28 = arith.constant 0 : index
    %c0_29 = arith.constant 0 : index
    %76 = vector.load %arg7[%c0_28, %c0_29] : memref<16x128xf32, #tpu.memory_space<vmem>>, vector<16x128xf32>
    tpu.vector_store %arg7[%c0_28, %c0_29], %75 {strides = array<i32>} : memref<16x128xf32, #tpu.memory_space<vmem>>, vector<16x128xf32>,
    return
  }
}

</mosaic_0001>

<bundles_post_ra>
// kernel: tpu_custom_call.1
= control target key start
LH: loop header
LB: loop body
LE: loop exit
PB: predicated region body
PF: predicated region fallthrough
CT: control target
= control target key end

     0   :  { %vm56_vm0 = vcmask 64512   ;;  %v1316_v5 = vmov 0   ;;  %s1631_s0 = inlined_call_operand.vmem [shape: f32[16,8], index: 0, kind: input, shape index: {}]   ;;  %s1632_s1 = inlined_call_operand.vmem [shape: f32[8,128], index: 1, kind: input, shape index: {}]   ;;  %s1633_s2 = inlined_call_operand.vmem [shape: f32[128,2], index: 2, kind: input, shape index: {}]   ;;  %s1634_s3 = inlined_call_operand.vmem [shape: f32[2,128], index: 3, kind: input, shape index: {}]   ;;  %s1635_s4 = inlined_call_operand.vmem [shape: s32[1,32], index: 4, kind: input, shape index: {}]   ;;  %s1636_s5 = inlined_call_operand.vmem [shape: s32[32,1], index: 5, kind: input, shape index: {}]   ;;  %s1637_s6 = inlined_call_operand.vmem [shape: s32[32,1], index: 6, kind: input, shape index: {}]   ;;  %s1638_s7 = inlined_call_operand.hbm [shape: f32[16,128], index: 7, kind: output, shape index: {}]  }
   0x1   :  { %v29_v0 = vld [vmem:[%s1632_s1] sm:$0xff]  ;;  %v28_v2 = vld [vmem:[%s1631_s0 + $0x8] sm:$0xff]  ;;  %1235 = vset.pattern.permute.xlu1 %v1316_v5  ;;  %1234 = vset.pattern.permute.xlu0 %v1316_v5 }
   0x2   :  { %v27_v1 = vld [vmem:[%s1631_s0] sm:$0xff]  ;;  %1032 = vmatprep.subr.mxu1 %v29_v0  ;;  %v49_v3 = vld [vmem:[%s1636_s5 + $0x8] sm:$0xff] }
   0x3   :  { %1034 = vmatprep.mubr.msk.f32.mxu1 %vm56_vm0, %v27_v1  ;;  %v48_v4 = vld [vmem:[%s1636_s5] sm:$0xff]  ;;  %1033 = vmatpush3.msra.mxu1 %v29_v0 }
   0x4   :  { %1035 = vmatmul.mubr.msk.f32.vlgmr.msra.gmra.mrb[0].mxu1 %vm56_vm0, %v28_v2 }
   0x5   :  { %12 = vsyncpa [#allocation3], 0  ;;  %147 = vperm.xlu1 %1235, %v49_v3   ;;  %144 = vperm.xlu0 %1234, %v48_v4   ;;  %v53_v6 = vld [vmem:[%s1637_s6 + $0x8] sm:$0xff]  ;;  %v52_v7 = vld [vmem:[%s1637_s6] sm:$0xff]  ;;  %s1317_s0 = smov 127   ;;  %v138_v43 = vlaneseq  ;;  %vm201_vm1 = vcmask 130048  }
   0x6   :  { %v54_v8 = vld [vmem:[%s1637_s6 + $0x10] sm:$0xff]  ;;  %v55_v10 = vld [vmem:[%s1637_s6 + $0x18] sm:$0xff]  ;;  %v30_v12 = vld [vmem:[%s1633_s2] sm:$0xff]  ;;  %v1318_v47 = vmov 0.0   ;;  %vm848_vm15 = vcmask 261120  }
   0x7   :  { %v50_v9 = vld [vmem:[%s1636_s5 + $0x10] sm:$0xff]  ;;  %v51_v11 = vld [vmem:[%s1636_s5 + $0x18] sm:$0xff]  ;;  %v31_v13 = vld [vmem:[%s1633_s2 + $0x8] sm:$0xff]  ;;  %v1460_v45 = vand.u32 127, %v138_v43 }
   0x8   :  { %v32_v14 = vld [vmem:[%s1633_s2 + $0x10] sm:$0xff]  ;;  %v1236_v15 = vpack.i.bf16 %v31_v13, %v30_v12  ;;  %v33_v16 = vld [vmem:[%s1633_s2 + $0x18] sm:$0xff]  ;;  %v34_v17 = vld [vmem:[%s1633_s2 + $0x20] sm:$0xff]  ;;  %v1413_v19 = vpack.c.bf16 %v31_v13, %v30_v12 }
   0x9   :  { %171 = vperm.xlu1 %1235, %v53_v6   ;;  %168 = vperm.xlu0 %1234, %v52_v7   ;;  %v35_v18 = vld [vmem:[%s1633_s2 + $0x28] sm:$0xff]  ;;  %v1241_v20 = vpack.i.bf16 %v33_v16, %v32_v14  ;;  %v36_v21 = vld [vmem:[%s1633_s2 + $0x30] sm:$0xff]  ;;  %v37_v22 = vld [vmem:[%s1633_s2 + $0x38] sm:$0xff]  ;;  %v1421_v23 = vpack.c.bf16 %v33_v16, %v32_v14 }
   0xa   :  { %v1246_v24 = vpack.i.bf16 %v35_v18, %v34_v17  ;;  %v1251_v25 = vpack.i.bf16 %v37_v22, %v36_v21  ;;  %v38_v26 = vld [vmem:[%s1633_s2 + $0x40] sm:$0xff]  ;;  %v39_v27 = vld [vmem:[%s1633_s2 + $0x48] sm:$0xff]  ;;  %v40_v28 = vld [vmem:[%s1633_s2 + $0x50] sm:$0xff]  ;;  %v1435_v30 = vpack.c.bf16 %v35_v18, %v34_v17  ;;  %v1449_v37 = vpack.c.bf16 %v37_v22, %v36_v21 }
   0xb   :  { %v41_v29 = vld [vmem:[%s1633_s2 + $0x58] sm:$0xff]  ;;  %v1256_v31 = vpack.i.bf16 %v39_v27, %v38_v26  ;;  %v42_v33 = vld [vmem:[%s1633_s2 + $0x60] sm:$0xff]  ;;  %v43_v34 = vld [vmem:[%s1633_s2 + $0x68] sm:$0xff]  ;;  %v1451_v40 = vpack.c.bf16 %v39_v27, %v38_v26 }
   0xc   :  { %v1261_v32 = vpack.i.bf16 %v41_v29, %v40_v28  ;;  %v44_v35 = vld [vmem:[%s1633_s2 + $0x70] sm:$0xff]  ;;  %v45_v36 = vld [vmem:[%s1633_s2 + $0x78] sm:$0xff]  ;;  %v1266_v38 = vpack.i.bf16 %v43_v34, %v42_v33  ;;  %v1453_v41 = vpack.c.bf16 %v41_v29, %v40_v28  ;;  %v1455_v42 = vpack.c.bf16 %v43_v34, %v42_v33 }
   0xd   :  { %174 = vperm.xlu1 %1235, %v54_v8   ;;  %150 = vperm.xlu0 %1234, %v50_v9   ;;  %v1271_v39 = vpack.i.bf16 %v45_v36, %v44_v35  ;;  %v1457_v44 = vpack.c.bf16 %v45_v36, %v44_v35  ;;  %v1539_v34 = vshrl.u32 %v138_v43, 7  ;;  %v46_v36 = vld [vmem:[%s1634_s3] sm:$0x3] }
   0xf   :  { %v664_v35 = vsub.s32 1, %v1539_v34 }
  0x11   :  { %177 = vperm.xlu1 %1235, %v55_v10   ;;  %153 = vperm.xlu0 %1234, %v51_v11  }
  0x15   :  { %1237 = vrot.lane.b32.xlu0 %v1236_v15, %s1317_s0  ;;  %1242 = vrot.lane.b32.xlu1 %v1241_v20, %s1317_s0 }
  0x19   :  { %1247 = vrot.lane.b32.xlu0 %v1246_v24, %s1317_s0  ;;  %1252 = vrot.lane.b32.xlu1 %v1251_v25, %s1317_s0 }
  0x1d   :  { %1257 = vrot.lane.b32.xlu0 %v1256_v31, %s1317_s0  ;;  %1262 = vrot.lane.b32.xlu1 %v1261_v32, %s1317_s0 }
  0x21   :  { %1267 = vrot.lane.b32.xlu0 %v1266_v38, %s1317_s0  ;;  %1272 = vrot.lane.b32.xlu1 %v1271_v39, %s1317_s0  ;;  %v665_v38 = vrot.slane %v46_v36, %v664_v35 }
  0x84   :  { %v1462_v46 = vpop.permute.xlu0 %144  ;;  %v1477_v51 = vpop.permute.xlu1 %147 }
  0x85   :  { %vm155_vm2 = vcmp.eq.s32.totalorder %v1460_v45, %v1462_v46  ;;  %vm156_vm4 = vcmp.eq.s32.totalorder %v1460_v45, %v1477_v51 }
  0x86   :  { %v1470_v48 = vsel %vm155_vm2, 1.0, %v1318_v47  ;;  %v1493_v4 = vsel %vm156_vm4, 1.0, %v1318_v47 }
  0x87   :  { %1041 = vmatprep.mubr.msk.f32.mxu1 %vm201_vm1, %v1470_v48 }
  0x88   :  { %v169_v49 = vpop.permute.xlu0 %168  ;;  %v172_v52 = vpop.permute.xlu1 %171 }
  0x89   :  { %vm179_vm3 = vcmp.eq.s32.totalorder %v1460_v45, %v169_v49  ;;  %vm180_vm5 = vcmp.eq.s32.totalorder %v1460_v45, %v172_v52 }
  0x8a   :  { %v954_v50 = vsel %vm179_vm3, 1.0, %v1318_v47  ;;  %v955_v5 = vsel %vm180_vm5, 1.0, %v1318_v47 }
  0x8b   :  { %1051 = vmatprep.mubr.msk.f32.mxu0 %vm201_vm1, %v954_v50 }
  0x8c   :  { %v1479_v53 = vpop.permute.xlu0 %150  ;;  %v175_v54 = vpop.permute.xlu1 %174 }
  0x8d   :  { %vm181_vm6 = vcmp.eq.s32.totalorder %v1460_v45, %v175_v54  ;;  %vm157_vm7 = vcmp.eq.s32.totalorder %v1460_v45, %v1479_v53 }
  0x8e   :  { %v956_v9 = vsel %vm181_vm6, 1.0, %v1318_v47  ;;  %v1503_v10 = vsel %vm157_vm7, 1.0, %v1318_v47 }
  0x90   :  { %v1481_v55 = vpop.permute.xlu0 %153  ;;  %v178_v56 = vpop.permute.xlu1 %177 }
  0x91   :  { %vm182_vm8 = vcmp.eq.s32.totalorder %v1460_v45, %v178_v56  ;;  %vm158_vm9 = vcmp.eq.s32.totalorder %v1460_v45, %v1481_v55 }
  0x92   :  { %v957_v12 = vsel %vm182_vm8, 1.0, %v1318_v47  ;;  %v1519_v13 = vsel %vm158_vm9, 1.0, %v1318_v47 }
  0x94   :  { %v1238_v59 = vpop.permute.xlu0 %1237  ;;  %v1243_v63 = vpop.permute.xlu1 %1242 }
  0x95   :  { %v1240_v61 = vunpack.i.h.bf16 %v1238_v59  ;;  %v1239_v62 = vunpack.i.l.bf16 %v1238_v59  ;;  %v1245_v0 = vunpack.i.h.bf16 %v1243_v63  ;;  %v1244_v1 = vunpack.i.l.bf16 %v1243_v63 }
  0x97   :  { %v1152_v2 = vpack.c.bf16 %v1240_v61, %v1239_v62  ;;  %v1156_v6 = vpack.c.bf16 %v1245_v0, %v1244_v1 }
  0x98   :  { %v1248_v3 = vpop.permute.xlu0 %1247  ;;  %v1253_v11 = vpop.permute.xlu1 %1252 }
  0x99   :  { %v1250_v7 = vunpack.i.h.bf16 %v1248_v3  ;;  %v1249_v8 = vunpack.i.l.bf16 %v1248_v3  ;;  %v1255_v15 = vunpack.i.h.bf16 %v1253_v11  ;;  %v1254_v16 = vunpack.i.l.bf16 %v1253_v11 }
  0x9b   :  { %v1160_v14 = vpack.c.bf16 %v1250_v7, %v1249_v8  ;;  %v1164_v18 = vpack.c.bf16 %v1255_v15, %v1254_v16 }
  0x9c   :  { %v1258_v17 = vpop.permute.xlu0 %1257  ;;  %v1263_v21 = vpop.permute.xlu1 %1262 }
  0x9d   :  { %v1259_v20 = vunpack.i.l.bf16 %v1258_v17  ;;  %v1265_v24 = vunpack.i.h.bf16 %v1263_v21  ;;  %v1264_v25 = vunpack.i.l.bf16 %v1263_v21 }
  0xa0   :  { %v1268_v26 = vpop.permute.xlu0 %1267  ;;  %v1273_v29 = vpop.permute.xlu1 %1272 }
  0xa1   :  { %v1270_v27 = vunpack.i.h.bf16 %v1268_v26  ;;  %v1269_v28 = vunpack.i.l.bf16 %v1268_v26  ;;  %v1275_v31 = vunpack.i.h.bf16 %v1273_v29  ;;  %v1274_v32 = vunpack.i.l.bf16 %v1273_v29 }
  0xa3   :  { %v1180_v33 = vpack.c.bf16 %v1275_v31, %v1274_v32 }
  0xd7   :  { %v1036_v57 = vpop.f32.mrb[0].mxu1 }
  0xd8   :  { %v129_v58 = vpop.f32.mrb[1].mxu1 }
  0xd9   :  { %v1144_v60 = vpack.c.bf16 %v1036_v57, %v129_v58 }
  0xdb   :  { %1145 = vmatprep.subr.bf16.mxu1 %v1144_v60  ;;  %1149 = vmatprep.subr.bf16.mxu0 %v1144_v60 }
  0xdc   :  { %1147 = vmatpush3.bf16.msra.mxu1 %v1144_v60  ;;  %1151 = vmatpush3.bf16.msra.mxu0 %v1144_v60 }
  0xdd   :  { %1153 = vmatprep.subr.bf16.mxu0 %v1152_v2  ;;  %1185 = vmatprep.subr.bf16.mxu1 %v1413_v19 }
  0xdf   :  { %1042 = vmatmul.mubr.msk.f32.vlgmr.msra.gmra.mrb[2].mxu1 %vm201_vm1, %v1493_v4  ;;  %1052 = vmatmul.mubr.msk.f32.vlgmr.msra.gmra.mrb[0].mxu0 %vm201_vm1, %v955_v5 }
  0xe0   :  { %1044 = vmatprep.mubr.msk.f32.mxu1 %vm201_vm1, %v1503_v10  ;;  %1054 = vmatprep.mubr.msk.f32.mxu0 %vm201_vm1, %v956_v9 }
  0xe1   :  { %1155 = vmatpush3.bf16.msra.mxu0 %v1152_v2  ;;  %1187 = vmatpush3.bf16.msra.mxu1 %v1413_v19  ;;  %v1260_v19 = vunpack.i.h.bf16 %v1258_v17 }
  0xe2   :  { %1157 = vmatprep.subr.bf16.mxu0 %v1156_v6  ;;  %1189 = vmatprep.subr.bf16.mxu1 %v1421_v23 }
  0xe3   :  { %1045 = vmatmul.mubr.msk.f32.gmra.mrb[4].mxu1 %vm201_vm1, %v1519_v13  ;;  %1055 = vmatmul.mubr.msk.f32.gmra.mrb[2].mxu0 %vm201_vm1, %v957_v12  ;;  %v1168_v22 = vpack.c.bf16 %v1260_v19, %v1259_v20 }
  0xe5   :  { %1159 = vmatpush3.bf16.msra.mxu0 %v1156_v6  ;;  %1191 = vmatpush3.bf16.msra.mxu1 %v1421_v23  ;;  %v1172_v23 = vpack.c.bf16 %v1265_v24, %v1264_v25 }
  0xe6   :  { %1161 = vmatprep.subr.bf16.mxu0 %v1160_v14  ;;  %1193 = vmatprep.subr.bf16.mxu1 %v1435_v30 }
  0xe9   :  { %1163 = vmatpush3.bf16.msra.mxu0 %v1160_v14  ;;  %1195 = vmatpush3.bf16.msra.mxu1 %v1435_v30  ;;  %v1176_v30 = vpack.c.bf16 %v1270_v27, %v1269_v28 }
  0xea   :  { %1165 = vmatprep.subr.bf16.mxu0 %v1164_v18  ;;  %1197 = vmatprep.subr.bf16.mxu1 %v1449_v37 }
  0xed   :  { %1167 = vmatpush3.bf16.msra.mxu0 %v1164_v18  ;;  %1199 = vmatpush3.bf16.msra.mxu1 %v1449_v37  ;;  %v640_v37 = vsub.s32 0, %v1539_v34 }
  0xee   :  { %1169 = vmatprep.subr.bf16.mxu0 %v1168_v22  ;;  %1201 = vmatprep.subr.bf16.mxu1 %v1451_v40 }
  0xef   :  { %v641_v52 = vrot.slane %v46_v36, %v640_v37 }
  0xf1   :  { %1171 = vmatpush3.bf16.msra.mxu0 %v1168_v22  ;;  %1203 = vmatpush3.bf16.msra.mxu1 %v1451_v40 }
  0xf2   :  { %1173 = vmatprep.subr.bf16.mxu0 %v1172_v23  ;;  %1205 = vmatprep.subr.bf16.mxu1 %v1453_v41 }
  0xf5   :  { %1175 = vmatpush3.bf16.msra.mxu0 %v1172_v23  ;;  %1207 = vmatpush3.bf16.msra.mxu1 %v1453_v41 }
  0xf6   :  { %1177 = vmatprep.subr.bf16.mxu0 %v1176_v30  ;;  %1209 = vmatprep.subr.bf16.mxu1 %v1455_v42 }
  0xf9   :  { %1179 = vmatpush3.bf16.msra.mxu0 %v1176_v30  ;;  %1211 = vmatpush3.bf16.msra.mxu1 %v1455_v42 }
  0xfa   :  { %1181 = vmatprep.subr.bf16.mxu0 %v1180_v33  ;;  %1213 = vmatprep.subr.bf16.mxu1 %v1457_v44 }
  0xfd   :  { %1183 = vmatpush3.bf16.msra.mxu0 %v1180_v33  ;;  %1215 = vmatpush3.bf16.msra.mxu1 %v1457_v44 }
 0x1b2   :  { %v1043_v39 = vpop.f32.mrb[2].mxu1  ;;  %v1546_v40 = vpop.f32.mrb[0].mxu0 }
 0x1b3   :  { %v280_v41 = vpop.f32.mrb[3].mxu1  ;;  %v1548_v42 = vpop.f32.mrb[1].mxu0  ;;  %v659_v44 = vmul.f32 %v1546_v40, %v1043_v39  ;;  %v631_v43 = vsub.f32 %v1546_v40, %v1043_v39 }
 0x1b4   :  { %1089 = vmatprep.mubr.f32.mxu0 %v1548_v42  ;;  %1127 = vmatprep.mubr.f32.mxu1 %v280_v41  ;;  %v658_v49 = vmul.f32 %v1548_v42, %v280_v41  ;;  %v630_v50 = vsub.f32 %v1548_v42, %v280_v41 }
 0x1b5   :  { %1090 = vmatmul.mubr.f32.vlgmr.msra.gmra.mrb[4].mxu0 %v1546_v40  ;;  %1128 = vmatmul.mubr.f32.vlgmr.msra.gmra.mrb[6].mxu1 %v1043_v39  ;;  %v667_v54 = vmul.f32 %v665_v38, %v659_v44  ;;  %v635_v60 = vand.u32 2147483647, %v631_v43 }
 0x1b6   :  { %v1046_v56 = vpop.f32.mrb[4].mxu1  ;;  %v1556_v57 = vpop.f32.mrb[2].mxu0  ;;  %v666_v58 = vmul.f32 %v665_v38, %v658_v49  ;;  %v634_v59 = vand.u32 2147483647, %v630_v50 }
 0x1b7   :  { %v1558_v61 = vpop.f32.mrb[3].mxu0  ;;  %672 = vadd.xlane.f32.xlu0 %v667_v54  ;;  %v290_v62 = vpop.f32.mrb[5].mxu1  ;;  %v633_v63 = vsub.f32 %v1556_v57, %v1046_v56  ;;  %v661_v0 = vmul.f32 %v1556_v57, %v1046_v56  ;;  %v643_v6 = vmul.f32 %v641_v52, %v635_v60 }
 0x1b8   :  { %v632_v1 = vsub.f32 %v1558_v61, %v290_v62  ;;  %1092 = vmatprep.mubr.f32.mxu0 %v1558_v61  ;;  %670 = vadd.xlane.f32.xlu1 %v666_v58  ;;  %v642_v2 = vmul.f32 %v641_v52, %v634_v59  ;;  %v660_v3 = vmul.f32 %v1558_v61, %v290_v62 }
 0x1b9   :  { %1130 = vmatprep.mubr.f32.mxu1 %v290_v62  ;;  %1093 = vmatmul.mubr.f32.gmra.mrb[6].mxu0 %v1556_v57  ;;  %v637_v5 = vand.u32 2147483647, %v633_v63  ;;  %v669_v12 = vmul.f32 %v665_v38, %v661_v0 }
 0x1ba   :  { %1131 = vmatmul.mubr.f32.gmra.mrb[8].mxu1 %v1046_v56  ;;  %v636_v8 = vand.u32 2147483647, %v632_v1  ;;  %v668_v9 = vmul.f32 %v665_v38, %v660_v3 }
 0x1bb   :  { %646 = vadd.xlane.f32.xlu0 %v642_v2  ;;  %v645_v7 = vmul.f32 %v641_v52, %v637_v5 }
 0x1bc   :  { %648 = vadd.xlane.f32.xlu1 %v643_v6  ;;  %v644_v11 = vmul.f32 %v641_v52, %v636_v8 }
 0x1bf   :  { %652 = vadd.xlane.f32.xlu0 %v645_v7 }
 0x1c0   :  { %674 = vadd.xlane.f32.xlu1 %v668_v9 }
 0x1c3   :  { %650 = vadd.xlane.f32.xlu0 %v644_v11 }
 0x1c7   :  { %676 = vadd.xlane.f32.xlu0 %v669_v12 }
 0x244   :  { %v673_v14 = vpop.xlane.xlu0 %672 }
 0x245   :  { %v671_v16 = vpop.xlane.xlu1 %670 }
 0x248   :  { %v647_v15 = vpop.xlane.xlu0 %646 }
 0x249   :  { %v649_v24 = vpop.xlane.xlu1 %648 }
 0x24c   :  { %v653_v17 = vpop.xlane.xlu0 %652 }
 0x24d   :  { %v675_v43 = vpop.xlane.xlu1 %674 }
 0x250   :  { %v651_v23 = vpop.xlane.xlu0 %650 }
 0x254   :  { %v677_v49 = vpop.xlane.xlu0 %676 }
 0x288   :  { %v1091_v18 = vpop.f32.mrb[4].mxu0  ;;  %v1129_v19 = vpop.f32.mrb[6].mxu1 }
 0x289   :  { %v617_v20 = vadd.f32 %v1129_v19, %v1091_v18  ;;  %v526_v21 = vpop.f32.mrb[5].mxu0  ;;  %v611_v22 = vpop.f32.mrb[7].mxu1 }
 0x28a   :  { %v612_v25 = vadd.f32 %v611_v22, %v526_v21 }
 0x28b   :  { %v655_v26 = vadd.f32 %v649_v24, %v617_v20 }
 0x28c   :  { %v654_v27 = vadd.f32 %v647_v15, %v612_v25  ;;  %v1094_v28 = vpop.f32.mrb[6].mxu0 }
 0x28d   :  { %v679_v29 = vadd.f32 %v673_v14, %v655_v26  ;;  %v1132_v30 = vpop.f32.mrb[8].mxu1  ;;  %v536_v31 = vpop.f32.mrb[7].mxu0 }
 0x28e   :  { %v678_v32 = vadd.f32 %v671_v16, %v654_v27  ;;  %v627_v33 = vadd.f32 %v1132_v30, %v1094_v28  ;;  %v621_v35 = vpop.f32.mrb[9].mxu1 }
 0x28f   :  { %v622_v36 = vadd.f32 %v621_v35, %v536_v31  ;;  %vm683_vm10 = vcmp.gt.f32.partialorder %v679_v29, 0.0  ;;  %v687_v37 = vmul.f32 0.2, %v679_v29 }
 0x290   :  { %v657_v38 = vadd.f32 %v653_v17, %v627_v33  ;;  %vm682_vm11 = vcmp.gt.f32.partialorder %v678_v32, 0.0  ;;  %v686_v39 = vmul.f32 0.2, %v678_v32 }
 0x291   :  { %v656_v41 = vadd.f32 %v651_v23, %v622_v36  ;;  %v691_v44 = vsel %vm683_vm10, %v679_v29, %v687_v37 }
 0x292   :  { %701 = vperm.xlu0 %1234, %v691_v44   ;;  %v690_v50 = vsel %vm682_vm11, %v678_v32, %v686_v39  ;;  %v681_v52 = vadd.f32 %v677_v49, %v657_v38 }
 0x293   :  { %v680_v54 = vadd.f32 %v675_v43, %v656_v41  ;;  %696 = vperm.xlu1 %1235, %v690_v50  }
 0x294   :  { %v689_v59 = vmul.f32 0.2, %v681_v52  ;;  %vm685_vm13 = vcmp.gt.f32.partialorder %v681_v52, 0.0 }
 0x295   :  { %vm684_vm12 = vcmp.gt.f32.partialorder %v680_v54, 0.0  ;;  %v688_v56 = vmul.f32 0.2, %v680_v54 }
 0x296   :  { %v693_v60 = vsel %vm685_vm13, %v681_v52, %v689_v59 }
 0x297   :  { %v692_v58 = vsel %vm684_vm12, %v680_v54, %v688_v56 }
 0x298   :  { %706 = vperm.xlu1 %1235, %v692_v58  }
 0x29c   :  { %711 = vperm.xlu1 %1235, %v693_v60  }
 0x311   :  { %v702_v63 = vpop.permute.xlu0 %701 }
 0x312   :  { %v697_v62 = vpop.permute.xlu1 %696  ;;  %v715_v1 = vsel %vm156_vm4, %v702_v63, -1e+30 }
 0x313   :  { %v714_v2 = vsel %vm155_vm2, %v697_v62, -1e+30  ;;  %v719_v5 = vsel %vm201_vm1, %v715_v1, -inf }
 0x314   :  { %v718_v6 = vsel %vm201_vm1, %v714_v2, -inf }
 0x315   :  { %v722_v11 = vmax.f32 %v718_v6, %v719_v5 }
 0x317   :  { %v707_v0 = vpop.permute.xlu1 %706 }
 0x318   :  { %v716_v3 = vsel %vm157_vm7, %v707_v0, -1e+30 }
 0x319   :  { %v720_v51 = vsel %vm201_vm1, %v716_v3, -inf }
 0x31b   :  { %v712_v7 = vpop.permute.xlu1 %711 }
 0x31c   :  { %v717_v8 = vsel %vm158_vm9, %v712_v7, -1e+30 }
 0x31d   :  { %v721_v9 = vsel %vm201_vm1, %v717_v8, -inf }
 0x31e   :  { %v723_v46 = vmax.f32 %v720_v51, %v721_v9 }
 0x320   :  { %v724_v12 = vmax.f32 %v722_v11, %v723_v46 }
 0x322   :  { %v725_v14 = vrot.slane %v724_v12, 4 }
 0x324   :  { %v726_v15 = vmax.f32 %v724_v12, %v725_v14 }
 0x326   :  { %v727_v53 = vrot.slane %v726_v15, 2 }
 0x328   :  { %v728_v16 = vmax.f32 %v726_v15, %v727_v53 }
 0x32a   :  { %v729_v17 = vrot.slane %v728_v16, 1 }
 0x32c   :  { %v730_v18 = vmax.f32 %v728_v16, %v729_v17 }
 0x32e   :  { %v732_v19 = vmul.f32 %v1493_v4, %v730_v18  ;;  %v731_v20 = vmul.f32 %v1470_v48, %v730_v18  ;;  %v733_v21 = vmul.f32 %v1503_v10, %v730_v18  ;;  %v734_v24 = vmul.f32 %v1519_v13, %v730_v18 }
 0x330   :  { %v738_v45 = vsel %vm201_vm1, %v732_v19, 0.0  ;;  %v735_v55 = vsel %vm201_vm1, %v731_v20, 0.0  ;;  %v741_v22 = vsel %vm201_vm1, %v733_v21, 0.0  ;;  %v744_v25 = vsel %vm201_vm1, %v734_v24, 0.0 }
 0x331   :  { %739 = vadd.xlane.f32.xlu1 %v738_v45  ;;  %736 = vadd.xlane.f32.xlu0 %v735_v55 }
 0x335   :  { %742 = vadd.xlane.f32.xlu0 %v741_v22 }
 0x339   :  { %745 = vadd.xlane.f32.xlu0 %v744_v25 }
 0x3be   :  { %v740_v26 = vpop.xlane.xlu1 %739  ;;  %v737_v23 = vpop.xlane.xlu0 %736 }
 0x3bf   :  { %v748_v27 = vsub.f32 %v691_v44, %v740_v26  ;;  %v747_v28 = vsub.f32 %v690_v50, %v737_v23 }
 0x3c1   :  { %v753_v29 = vmul.f32 1.442695, %v748_v27  ;;  %v751_v30 = vmul.f32 1.442695, %v747_v28  ;;  %v958_v28 = vld [vmem:[%s1635_s4] ss:$0 sm:$0xff] }
 0x3c2   :  { %v743_v31 = vpop.xlane.xlu0 %742  ;;  %vm195_vm14 = vcmp.eq.s32.totalorder %v1539_v34, %v958_v28  ;;  %s1319_s4 = smov [#allocation2]  }
 0x3c3   :  { %1276 = vpow2.f32 %v753_v29  ;;  %v749_v32 = vsub.f32 %v692_v58, %v743_v31  ;;  %v959_v29 = vsel %vm195_vm14, 1.0, %v1318_v47  ;;  %s937_s5 = sshll.u32 %s1319_s4, 4  ;;  %s938_s5 = int_to_ptr.vmem [resolvable:$true] %s937_s5 }
 0x3c4   :  { %1278 = vpow2.f32 %v751_v30  ;;  %1141 = vmatprep.mubr.msk.f32.mxu0 %vm848_vm15, %v959_v29  ;;  %s1292_s28 = scalar_lea.vmem %s938_s5, 256  ;;  %p1297_p1 = scmp.lt.s32.totalorder %s938_s5, %s938_s5 }
 0x3c5   :  { %v755_v33 = vmul.f32 1.442695, %v749_v32  ;;  %p1293_p0 = scmp.ne.s32.totalorder %s938_s5, %s1292_s28  ;;  %p1298_p2 = scmp.lt.s32.totalorder %s1292_s28, %s1292_s28 }
 0x3c6   :  { %v746_v35 = vpop.xlane.xlu0 %745 }
 0x3c7   :  { %1280 = vpow2.f32 %v755_v33  ;;  %v750_v36 = vsub.f32 %v693_v60, %v746_v35  ;;  %p1299_p3 = por %p1298_p2, %p1297_p1 }
 0x3c9   :  { %v757_v37 = vmul.f32 1.442695, %v750_v36  ;;  %p1300_p4 = pnand %p1299_p3, %p1293_p0 }
 0x3cb   :  { %1282 = vpow2.f32 %v757_v37  ;;  %v142_v37 = vadd.s32 8, %v1539_v34 }
 0x3cd   :  { %v1277_v38 = vpop.eup %1276  ;;  %vm196_vm0 = vcmp.eq.s32.totalorder %v142_v37, %v958_v28 }
 0x3ce   :  { %v1279_v39 = vpop.eup %1278  ;;  %766 = vperm.xlu0 %1234, %v1277_v38  }
 0x3cf   :  { %761 = vperm.xlu1 %1235, %v1279_v39  }
 0x3d1   :  { %v1281_v41 = vpop.eup %1280 }
 0x3d3   :  { %771 = vperm.xlu1 %1235, %v1281_v41  }
 0x3d5   :  { %v1283_v44 = vpop.eup %1282 }
 0x3d7   :  { %776 = vperm.xlu1 %1235, %v1283_v44  }
 0x44d   :  { %v767_v43 = vpop.permute.xlu0 %766 }
 0x44e   :  { %v762_v49 = vpop.permute.xlu1 %761  ;;  %v780_v52 = vmul.f32 %v1493_v4, %v767_v43  ;;  %v960_v43 = vsel %vm196_vm0, 1.0, %v1318_v47 }
 0x44f   :  { %v779_v50 = vmul.f32 %v1470_v48, %v762_v49 }
 0x450   :  { %v784_v58 = vsel %vm201_vm1, %v780_v52, 0.0 }
 0x451   :  { %v783_v56 = vsel %vm201_vm1, %v779_v50, 0.0 }
 0x452   :  { %v772_v54 = vpop.permute.xlu1 %771  ;;  %v785_v62 = vadd.f32 %v784_v58, %v783_v56 }
 0x453   :  { %v781_v59 = vmul.f32 %v1503_v10, %v772_v54 }
 0x455   :  { %v786_v60 = vsel %vm201_vm1, %v781_v59, 0.0 }
 0x456   :  { %v777_v63 = vpop.permute.xlu1 %776  ;;  %v787_v1 = vadd.f32 %v786_v60, %v785_v62 }
 0x457   :  { %v782_v0 = vmul.f32 %v1519_v13, %v777_v63 }
 0x459   :  { %v788_v2 = vsel %vm201_vm1, %v782_v0, 0.0 }
 0x45a   :  { %v789_v3 = vadd.f32 %v788_v2, %v787_v1 }
 0x45c   :  { %v790_v5 = vrot.slane %v789_v3, 4 }
 0x45e   :  { %v791_v6 = vadd.f32 %v790_v5, %v789_v3 }
 0x460   :  { %v792_v7 = vrot.slane %v791_v6, 2 }
 0x462   :  { %v793_v8 = vadd.f32 %v792_v7, %v791_v6 }
 0x464   :  { %v794_v51 = vrot.slane %v793_v8, 1 }
 0x466   :  { %v795_v9 = vadd.f32 %v794_v51, %v793_v8 }
 0x468   :  { %v797_v11 = vmul.f32 %v1493_v4, %v795_v9  ;;  %v796_v46 = vmul.f32 %v1470_v48, %v795_v9  ;;  %v798_v15 = vmul.f32 %v1503_v10, %v795_v9  ;;  %v799_v16 = vmul.f32 %v1519_v13, %v795_v9 }
 0x46a   :  { %v803_v12 = vsel %vm201_vm1, %v797_v11, 0.0  ;;  %v800_v14 = vsel %vm201_vm1, %v796_v46, 0.0  ;;  %v806_v53 = vsel %vm201_vm1, %v798_v15, 0.0  ;;  %v809_v17 = vsel %vm201_vm1, %v799_v16, 0.0 }
 0x46b   :  { %804 = vadd.xlane.f32.xlu1 %v803_v12  ;;  %801 = vadd.xlane.f32.xlu0 %v800_v14 }
 0x46f   :  { %807 = vadd.xlane.f32.xlu0 %v806_v53 }
 0x473   :  { %810 = vadd.xlane.f32.xlu0 %v809_v17 }
 0x4f8   :  { %v805_v18 = vpop.xlane.xlu1 %804  ;;  %v802_v4 = vpop.xlane.xlu0 %801 }
 0x4f9   :  { %v813_v19 = vadd.f32 1e-16, %v805_v18  ;;  %v812_v48 = vadd.f32 1e-16, %v802_v4 }
 0x4fb   :  { %1284 = vrcp.f32 %v813_v19 }
 0x4fc   :  { %1286 = vrcp.f32 %v812_v48  ;;  %v808_v20 = vpop.xlane.xlu0 %807 }
 0x4fd   :  { %v814_v45 = vadd.f32 1e-16, %v808_v20 }
 0x4ff   :  { %1288 = vrcp.f32 %v814_v45 }
 0x500   :  { %v811_v10 = vpop.xlane.xlu0 %810 }
 0x501   :  { %v815_v55 = vadd.f32 1e-16, %v811_v10 }
 0x503   :  { %1290 = vrcp.f32 %v815_v55 }
 0x505   :  { %v1285_v21 = vpop.eup %1284 }
 0x506   :  { %v1287_v22 = vpop.eup %1286  ;;  %v821_v24 = vmul.f32 %v1285_v21, %v1277_v38 }
 0x507   :  { %v820_v13 = vmul.f32 %v1287_v22, %v1279_v39 }
 0x508   :  { %831 = vperm.xlu0 %1234, %v821_v24  }
 0x509   :  { %v1289_v25 = vpop.eup %1288  ;;  %826 = vperm.xlu1 %1235, %v820_v13  }
 0x50a   :  { %v822_v26 = vmul.f32 %v1289_v25, %v1281_v41 }
 0x50d   :  { %v1291_v23 = vpop.eup %1290  ;;  %836 = vperm.xlu1 %1235, %v822_v26  }
 0x50e   :  { %v823_v27 = vmul.f32 %v1291_v23, %v1283_v44 }
 0x511   :  { %841 = vperm.xlu1 %1235, %v823_v27  }
 0x587   :  { %v832_v30 = vpop.permute.xlu0 %831 }
 0x588   :  { %v827_v31 = vpop.permute.xlu1 %826  ;;  %v845_v32 = vmul.f32 %v1546_v40, %v832_v30 }
 0x589   :  { %v844_v33 = vmul.f32 %v827_v31, %v1548_v42 }
 0x58b   :  { %v1216_v35 = vpack.c.bf16 %v845_v32, %v844_v33 }
 0x58c   :  { %v837_v36 = vpop.permute.xlu1 %836 }
 0x58d   :  { %1217 = vmatprep.subr.bf16.mxu0 %v1216_v35  ;;  %v846_v39 = vmul.f32 %v837_v36, %v1558_v61 }
 0x58e   :  { %1219 = vmatpush3.bf16.msra.mxu0 %v1216_v35 }
 0x590   :  { %v842_v38 = vpop.permute.xlu1 %841 }
 0x591   :  { %v847_v41 = vmul.f32 %v1556_v57, %v842_v38 }
 0x593   :  { %v1220_v44 = vpack.c.bf16 %v847_v41, %v846_v39 }
 0x595   :  { %1221 = vmatprep.subr.bf16.mxu0 %v1220_v44 }
 0x596   :  { %1223 = vmatpush3.bf16.msra.mxu0 %v1220_v44 }
 0x599   :  { %1142 = vmatmul.mubr.msk.f32.vlgmr.msra.gmra.mrb[8].mxu0 %vm848_vm15, %v960_v43 }
 0x66c   :  { %v1143_v40 = vpop.f32.mrb[8].mxu0 }
 0x66d   :  { %931 = vst [vmem:[#allocation2 + $0x8] sm:$0xff] %v1143_v40  ;;  %v921_v42 = vpop.f32.mrb[9].mxu0 }
 0x66e   :  { %930 = vst [vmem:[#allocation2] sm:$0xff] %v921_v42 }
 0x66f   :  { %1303 = shalt.err (!%p1300_p4)
}
 0x670   :  { %s1304_s8 = scalar_lea.hbm %s1638_s7, 256 }
 0x671   :  { %p1305_p5 = scmp.ne.s32.totalorder %s1638_s7, %s1304_s8  ;;  %p1308_p6 = scmp.lt.u32.totalorder %s1304_s8, %s1638_s7 }
 0x673   :  { %p1310_p7 = pnand %p1308_p6, %p1305_p5 }
 0x675   :  { %1313 = shalt.err (!%p1310_p7)
}
 0x676   :  { %s1320_s11 = smov 128   ;;  %s1321_s12 = smov 8  }
 0x677   :  { %943 = dma.vmem_to_hbm [thread:$0]  %s938_s5, 256, %s1638_s7, [#allocation3], %s1320_s11, %s1320_s11, %s1321_s12  }
 0x678   :  { %1314 = dma.done.wait [#allocation3], 256  }
 0x679   :  { %1315 = vsyncadd [#allocation3], 4294967040 }
 0x67a   :  { %947 = vsyncpa [#allocation3], 1 }

</bundles_post_ra>
